<compile_context>
chip_gen: v6e
topology: v6e:2x2x1
jax: 0.10.0
libtpu: 0.0.40
codegen_flags: <defaults>
</compile_context>

<pallas_src>
import jax
import jax.numpy as jnp
from jax import lax
from jax.experimental import pallas as pl
from jax.experimental.pallas import tpu as pltpu


def wac_kernel(x_ref, lens_ref, tw_ref, b_ref, out_ref):
    x = x_ref[...]                                       # (TB, L) int32 token ids
    tb, seq_len = x.shape
    vocab = tw_ref.shape[1]
    lens_i = lens_ref[...]                               # (TB, 1) int32

    # vocab id along lanes, reused by every token position.
    vocab_row = lax.broadcasted_iota(jnp.int32, (tb, vocab), 1)   # (TB, V)

    # counts[b, v] = #{ l : l < lens[b] and X[b, l] == v }
    # Static L-loop (L is small and static) -> plain VALU compare/add chain,
    # no (TB, L, V) one-hot tensor, live set ~TB/8 vregs.
    counts = jnp.zeros((tb, vocab), jnp.float32)
    for l in range(seq_len):
        tok = x[:, l:l + 1]                              # (TB, 1) static slice
        valid = jnp.int32(l) < lens_i                    # (TB, 1) bool
        match = (tok == vocab_row) & valid               # (TB, V) bool
        counts = counts + match.astype(jnp.float32)

    # Projection folded into the table: score = sum_v counts[b,v] * tw[v]
    # (one VPU multiply + one XLU lane reduce; no MXU involvement).
    score = jnp.sum(counts * tw_ref[...], axis=-1, keepdims=True)   # (TB, 1)

    # Divide by lens AFTER the projection (TB scalars, EUP approx reciprocal),
    # add scalar bias from SMEM, sigmoid on the EUP.
    # NOTE: assumes lens >= 1 (as in the data); lens == 0 would produce inf.
    inv_len = pl.reciprocal(lens_i.astype(jnp.float32), approx=True)
    out_ref[...] = jax.nn.sigmoid(score * inv_len + b_ref[0, 0])


def wac_forward(X, lens, embed_table, w, b, *, batch_block=256):
    """X: (B, L) int32, lens: (B,) int32. Returns (B, 1) float32 probs."""
    B, L = X.shape
    V, D = embed_table.shape

    # Large batch tile: whole batch if small, else 256-row blocks.  The
    # "parallel" grid axis lets v7x shard blocks across its two TensorCores
    # once B > batch_block (>= 2 grid steps).  Everything fits VMEM trivially.
    TB = B if B <= batch_block else batch_block
    assert B % TB == 0, "batch must be a multiple of the batch block"

    x_i = X.astype(jnp.int32)                             # (B, L)
    lens_i = lens.astype(jnp.int32).reshape(B, 1)         # (B, 1)

    # Fold the D->1 linear projection into the embedding table: tw[v] = table[v] . w
    tw = (embed_table.astype(jnp.float32)
          @ w.reshape(D, 1).astype(jnp.float32)).reshape(1, V)   # (1, V) lane-dense
    b2 = b.reshape(1, 1).astype(jnp.float32)              # (1, 1) scalar -> SMEM

    cost = pl.CostEstimate(
        flops=int(2 * B * L * V + 2 * B * V + 4 * B),
        transcendentals=int(2 * B),                       # reciprocal + sigmoid
        bytes_accessed=int(x_i.size * 4 + B * 4 + V * 4 + 4 + B * 4),
    )

    return pl.pallas_call(
        wac_kernel,
        out_shape=jax.ShapeDtypeStruct((B, 1), jnp.float32),
        grid=(B // TB,),
        in_specs=[
            pl.BlockSpec((TB, L), lambda i: (i, 0)),               # token ids
            pl.BlockSpec((TB, 1), lambda i: (i, 0)),               # lens
            pl.BlockSpec((1, V), lambda i: (0, 0)),                # folded table.w
            pl.BlockSpec(memory_space=pltpu.MemorySpace.SMEM),     # bias scalar
        ],
        out_specs=pl.BlockSpec((TB, 1), lambda i: (i, 0)),
        compiler_params=pltpu.CompilerParams(
            dimension_semantics=("parallel",)),
        cost_estimate=cost,
    )(x_i, lens_i, tw, b2)


def wac_reference(X, lens, embed_table, w, b):
    """Pure-JAX reference mirroring the PyTorch forward (real gather)."""
    B, L = X.shape
    embeds = embed_table[X].astype(jnp.float32)
    mask = (jnp.arange(L)[None, :] < lens[:, None]).astype(jnp.float32)
    embeds = embeds * mask[:, :, None]
    ave = embeds.mean(axis=1) * (L / lens.astype(jnp.float32))[:, None]
    score = ave @ w.reshape(-1, 1) + b.reshape(1, 1)
    return jax.nn.sigmoid(score)


if __name__ == "__main__":
    key = jax.random.PRNGKey(0)
    k_emb, k_w, k_b, k_x, k_len = jax.random.split(key, 5)

    vocab_size = 50
    embedding_dim = 32
    batch = 8
    seq = 8

    # Deterministic parameter init (matches __init__ shapes):
    #   embedding: 0.2 * (uniform[0,1) - 0.5), shape (V, D)
    embed_table = 0.2 * (jax.random.uniform(k_emb, (vocab_size, embedding_dim)) - 0.5)
    #   linear: (1, D) weight + (1,) bias, uniform(-1/sqrt(D), 1/sqrt(D))
    bound = 1.0 / jnp.sqrt(embedding_dim)
    w = jax.random.uniform(k_w, (1, embedding_dim), minval=-bound, maxval=bound)
    b = jax.random.uniform(k_b, (1,), minval=-bound, maxval=bound)

    # Example inputs (lens >= 1, so the 1/lens is well-defined)
    X = jax.random.randint(k_x, (batch, seq), 0, vocab_size, dtype=jnp.int32)
    lens = jax.random.randint(k_len, (batch,), 1, seq + 1, dtype=jnp.int32)

    prob = wac_forward(X, lens, embed_table, w, b)
    prob = jax.block_until_ready(prob)

    ref = wac_reference(X, lens, embed_table, w, b)
    assert prob.shape == (batch, 1)
    # Tolerance slightly looser than pure-f32: the kernel uses the approximate
    # EUP reciprocal for the 1/lens scaling and folds the projection into the
    # table (f32 reassociation only).
    assert jnp.allclose(prob, ref, atol=2e-4, rtol=2e-4), (prob, ref)

    print("KERNEL_OK")
</pallas_src>

<mosaic_0001>
module attributes {stable_mosaic.version = 11 : i64} {
  func.func @wac_kernel(%arg0: i32, %arg1: memref<8x8xi32, #tpu.memory_space<vmem>>, %arg2: memref<8x1xi32, #tpu.memory_space<vmem>>, %arg3: memref<1x50xf32, #tpu.memory_space<vmem>>, %arg4: memref<1x1xf32, #tpu.memory_space<smem>>, %arg5: memref<8x1xf32, #tpu.memory_space<vmem>>) attributes {dimension_semantics = [#tpu.dimension_semantics<parallel>], iteration_bounds = array<i64: 1>, scalar_prefetch = 0 : i64, scratch_operands = 0 : i64, tpu.core_type = #tpu.core_type<tc>, window_params = [{transform_indices = @transform_0, window_bounds = array<i64: 8, 8>}, {transform_indices = @transform_1, window_bounds = array<i64: 8, 1>}, {pipeline_mode = #tpu.pipeline_mode<synchronous>, transform_indices = @transform_2, window_bounds = array<i64: 1, 50>}, {transform_indices = @transform_3, window_bounds = array<i64: 1, 1>}, {transform_indices = @transform_4, window_bounds = array<i64: 8, 1>}]} {
    %c0 = arith.constant 0 : index
    %c0_0 = arith.constant 0 : index
    %0 = vector.load %arg1[%c0, %c0_0] : memref<8x8xi32, #tpu.memory_space<vmem>>, vector<8x8xi32>
    %c0_1 = arith.constant 0 : index
    %c0_2 = arith.constant 0 : index
    %1 = vector.load %arg2[%c0_1, %c0_2] : memref<8x1xi32, #tpu.memory_space<vmem>>, vector<8x1xi32>
    %2 = tpu.iota {dimensions = array<i32: 1>} : vector<8x50xi32>
    %cst = arith.constant 0.000000e+00 : f32
    %3 = vector.broadcast %cst : f32 to vector<8x50xf32>
    %4 = vector.extract_strided_slice %0 {offsets = [0, 0], sizes = [8, 1], strides = [1, 1]} : vector<8x8xi32> to vector<8x1xi32>
    %c0_i32 = arith.constant 0 : i32
    %5 = vector.broadcast %c0_i32 : i32 to vector<8x1xi32>
    %6 = arith.cmpi slt, %5, %1 : vector<8x1xi32>
    %7 = vector.broadcast %4 : vector<8x1xi32> to vector<8x50xi32>
    %8 = arith.cmpi eq, %7, %2 : vector<8x50xi32>
    %9 = vector.broadcast %6 : vector<8x1xi1> to vector<8x50xi1>
    %10 = arith.andi %8, %9 : vector<8x50xi1>
    %11 = arith.extui %10 : vector<8x50xi1> to vector<8x50xi32>
    %12 = arith.sitofp %11 : vector<8x50xi32> to vector<8x50xf32>
    %13 = arith.addf %3, %12 : vector<8x50xf32>
    %14 = vector.extract_strided_slice %0 {offsets = [0, 1], sizes = [8, 1], strides = [1, 1]} : vector<8x8xi32> to vector<8x1xi32>
    %c1_i32 = arith.constant 1 : i32
    %15 = vector.broadcast %c1_i32 : i32 to vector<8x1xi32>
    %16 = arith.cmpi slt, %15, %1 : vector<8x1xi32>
    %17 = vector.broadcast %14 : vector<8x1xi32> to vector<8x50xi32>
    %18 = arith.cmpi eq, %17, %2 : vector<8x50xi32>
    %19 = vector.broadcast %16 : vector<8x1xi1> to vector<8x50xi1>
    %20 = arith.andi %18, %19 : vector<8x50xi1>
    %21 = arith.extui %20 : vector<8x50xi1> to vector<8x50xi32>
    %22 = arith.sitofp %21 : vector<8x50xi32> to vector<8x50xf32>
    %23 = arith.addf %13, %22 : vector<8x50xf32>
    %24 = vector.extract_strided_slice %0 {offsets = [0, 2], sizes = [8, 1], strides = [1, 1]} : vector<8x8xi32> to vector<8x1xi32>
    %c2_i32 = arith.constant 2 : i32
    %25 = vector.broadcast %c2_i32 : i32 to vector<8x1xi32>
    %26 = arith.cmpi slt, %25, %1 : vector<8x1xi32>
    %27 = vector.broadcast %24 : vector<8x1xi32> to vector<8x50xi32>
    %28 = arith.cmpi eq, %27, %2 : vector<8x50xi32>
    %29 = vector.broadcast %26 : vector<8x1xi1> to vector<8x50xi1>
    %30 = arith.andi %28, %29 : vector<8x50xi1>
    %31 = arith.extui %30 : vector<8x50xi1> to vector<8x50xi32>
    %32 = arith.sitofp %31 : vector<8x50xi32> to vector<8x50xf32>
    %33 = arith.addf %23, %32 : vector<8x50xf32>
    %34 = vector.extract_strided_slice %0 {offsets = [0, 3], sizes = [8, 1], strides = [1, 1]} : vector<8x8xi32> to vector<8x1xi32>
    %c3_i32 = arith.constant 3 : i32
    %35 = vector.broadcast %c3_i32 : i32 to vector<8x1xi32>
    %36 = arith.cmpi slt, %35, %1 : vector<8x1xi32>
    %37 = vector.broadcast %34 : vector<8x1xi32> to vector<8x50xi32>
    %38 = arith.cmpi eq, %37, %2 : vector<8x50xi32>
    %39 = vector.broadcast %36 : vector<8x1xi1> to vector<8x50xi1>
    %40 = arith.andi %38, %39 : vector<8x50xi1>
    %41 = arith.extui %40 : vector<8x50xi1> to vector<8x50xi32>
    %42 = arith.sitofp %41 : vector<8x50xi32> to vector<8x50xf32>
    %43 = arith.addf %33, %42 : vector<8x50xf32>
    %44 = vector.extract_strided_slice %0 {offsets = [0, 4], sizes = [8, 1], strides = [1, 1]} : vector<8x8xi32> to vector<8x1xi32>
    %c4_i32 = arith.constant 4 : i32
    %45 = vector.broadcast %c4_i32 : i32 to vector<8x1xi32>
    %46 = arith.cmpi slt, %45, %1 : vector<8x1xi32>
    %47 = vector.broadcast %44 : vector<8x1xi32> to vector<8x50xi32>
    %48 = arith.cmpi eq, %47, %2 : vector<8x50xi32>
    %49 = vector.broadcast %46 : vector<8x1xi1> to vector<8x50xi1>
    %50 = arith.andi %48, %49 : vector<8x50xi1>
    %51 = arith.extui %50 : vector<8x50xi1> to vector<8x50xi32>
    %52 = arith.sitofp %51 : vector<8x50xi32> to vector<8x50xf32>
    %53 = arith.addf %43, %52 : vector<8x50xf32>
    %54 = vector.extract_strided_slice %0 {offsets = [0, 5], sizes = [8, 1], strides = [1, 1]} : vector<8x8xi32> to vector<8x1xi32>
    %c5_i32 = arith.constant 5 : i32
    %55 = vector.broadcast %c5_i32 : i32 to vector<8x1xi32>
    %56 = arith.cmpi slt, %55, %1 : vector<8x1xi32>
    %57 = vector.broadcast %54 : vector<8x1xi32> to vector<8x50xi32>
    %58 = arith.cmpi eq, %57, %2 : vector<8x50xi32>
    %59 = vector.broadcast %56 : vector<8x1xi1> to vector<8x50xi1>
    %60 = arith.andi %58, %59 : vector<8x50xi1>
    %61 = arith.extui %60 : vector<8x50xi1> to vector<8x50xi32>
    %62 = arith.sitofp %61 : vector<8x50xi32> to vector<8x50xf32>
    %63 = arith.addf %53, %62 : vector<8x50xf32>
    %64 = vector.extract_strided_slice %0 {offsets = [0, 6], sizes = [8, 1], strides = [1, 1]} : vector<8x8xi32> to vector<8x1xi32>
    %c6_i32 = arith.constant 6 : i32
    %65 = vector.broadcast %c6_i32 : i32 to vector<8x1xi32>
    %66 = arith.cmpi slt, %65, %1 : vector<8x1xi32>
    %67 = vector.broadcast %64 : vector<8x1xi32> to vector<8x50xi32>
    %68 = arith.cmpi eq, %67, %2 : vector<8x50xi32>
    %69 = vector.broadcast %66 : vector<8x1xi1> to vector<8x50xi1>
    %70 = arith.andi %68, %69 : vector<8x50xi1>
    %71 = arith.extui %70 : vector<8x50xi1> to vector<8x50xi32>
    %72 = arith.sitofp %71 : vector<8x50xi32> to vector<8x50xf32>
    %73 = arith.addf %63, %72 : vector<8x50xf32>
    %74 = vector.extract_strided_slice %0 {offsets = [0, 7], sizes = [8, 1], strides = [1, 1]} : vector<8x8xi32> to vector<8x1xi32>
    %c7_i32 = arith.constant 7 : i32
    %75 = vector.broadcast %c7_i32 : i32 to vector<8x1xi32>
    %76 = arith.cmpi slt, %75, %1 : vector<8x1xi32>
    %77 = vector.broadcast %74 : vector<8x1xi32> to vector<8x50xi32>
    %78 = arith.cmpi eq, %77, %2 : vector<8x50xi32>
    %79 = vector.broadcast %76 : vector<8x1xi1> to vector<8x50xi1>
    %80 = arith.andi %78, %79 : vector<8x50xi1>
    %81 = arith.extui %80 : vector<8x50xi1> to vector<8x50xi32>
    %82 = arith.sitofp %81 : vector<8x50xi32> to vector<8x50xf32>
    %83 = arith.addf %73, %82 : vector<8x50xf32>
    %c0_3 = arith.constant 0 : index
    %c0_4 = arith.constant 0 : index
    %84 = vector.load %arg3[%c0_3, %c0_4] : memref<1x50xf32, #tpu.memory_space<vmem>>, vector<1x50xf32>
    %85 = vector.broadcast %84 : vector<1x50xf32> to vector<8x50xf32>
    %86 = arith.mulf %83, %85 : vector<8x50xf32>
    %cst_5 = arith.constant dense<0.000000e+00> : vector<8xf32>
    %87 = vector.multi_reduction <add>, %86, %cst_5 [1] : vector<8x50xf32> to vector<8xf32>
    %88 = vector.shape_cast %87 : vector<8xf32> to vector<8x1xf32>
    %89 = arith.sitofp %1 : vector<8x1xi32> to vector<8x1xf32>
    %90 = tpu.reciprocal %89 {approx = true} : vector<8x1xf32> -> vector<8x1xf32>
    %91 = arith.mulf %88, %90 : vector<8x1xf32>
    %c0_6 = arith.constant 0 : index
    %c0_7 = arith.constant 0 : index
    %92 = memref.load %arg4[%c0_6, %c0_7] : memref<1x1xf32, #tpu.memory_space<smem>>
    %93 = vector.broadcast %92 : f32 to vector<8x1xf32>
    %94 = arith.addf %91, %93 : vector<8x1xf32>
    %95 = arith.negf %94 : vector<8x1xf32>
    %96 = math.exp %95 : vector<8x1xf32>
    %cst_8 = arith.constant 1.000000e+00 : f32
    %97 = vector.broadcast %cst_8 : f32 to vector<8x1xf32>
    %98 = arith.addf %97, %96 : vector<8x1xf32>
    %99 = arith.divf %97, %98 : vector<8x1xf32>
    %c0_9 = arith.constant 0 : index
    %c0_10 = arith.constant 0 : index
    %100 = vector.load %arg5[%c0_9, %c0_10] : memref<8x1xf32, #tpu.memory_space<vmem>>, vector<8x1xf32>
    tpu.vector_store %arg5[%c0_9, %c0_10], %99 {strides = array<i32>} : memref<8x1xf32, #tpu.memory_space<vmem>>, vector<8x1xf32>,
    return
  }
  func.func @transform_0(%arg0: i32) -> (i32, i32) {
    %c0_i32 = arith.constant 0 : i32
    %c0_i32_0 = arith.constant 0 : i32
    return %arg0, %c0_i32 : i32, i32
  }
  func.func @transform_1(%arg0: i32) -> (i32, i32) {
    %c0_i32 = arith.constant 0 : i32
    %c0_i32_0 = arith.constant 0 : i32
    return %arg0, %c0_i32 : i32, i32
  }
  func.func @transform_2(%arg0: i32) -> (i32, i32) {
    %c0_i32 = arith.constant 0 : i32
    %c0_i32_0 = arith.constant 0 : i32
    %c0_i32_1 = arith.constant 0 : i32
    return %c0_i32, %c0_i32_0 : i32, i32
  }
  func.func @transform_3(%arg0: i32) -> (i32, i32) {
    %c0_i32 = arith.constant 0 : i32
    %c0_i32_0 = arith.constant 0 : i32
    %c0_i32_1 = arith.constant 0 : i32
    return %c0_i32, %c0_i32_0 : i32, i32
  }
  func.func @transform_4(%arg0: i32) -> (i32, i32) {
    %c0_i32 = arith.constant 0 : i32
    %c0_i32_0 = arith.constant 0 : i32
    return %arg0, %c0_i32 : i32, i32
  }
}

</mosaic_0001>

<bundles_post_ra>
// kernel: tpu_custom_call.1
= control target key start
LH: loop header
LB: loop body
LE: loop exit
PB: predicated region body
PF: predicated region fallthrough
CT: control target
= control target key end

     0   :  { %v201_v0 = vmov 2   ;;  %v202_v1 = vmov 1   ;;  %v203_v4 = vmov 0   ;;  %v204_v9 = vmov 3   ;;  %s261_s0 = inlined_call_operand.vmem [shape: s32[8,8], index: 0, kind: input, shape index: {}]   ;;  %s262_s1 = inlined_call_operand.vmem [shape: s32[8,1], index: 1, kind: input, shape index: {}]   ;;  %s263_s2 = inlined_call_operand.vmem [shape: f32[1,50], index: 2, kind: input, shape index: {}]   ;;  %s264_s3 = inlined_call_operand.<no memory space> [shape: f32[1,1], index: 3, kind: input, shape index: {}]   ;;  %s265_s4 = inlined_call_operand.vmem [shape: f32[8,1], index: 4, kind: output, shape index: {}]  }
   0x1   :  { %184 = vset.pattern.permute.xlu0 %v201_v0  ;;  %183 = vset.pattern.permute.xlu1 %v202_v1  ;;  %v18_v2 = vld [vmem:[%s261_s0] sm:$0xff]  ;;  %v205_v10 = vmov 5   ;;  %v206_v11 = vmov 4   ;;  %v207_v15 = vmov 6   ;;  %v208_v16 = vmov 7  }
   0x2   :  { %v241_v3 = vld [vmem:[%s262_s1] sm:$0xff]  ;;  %52 = vperm.xlu0 %184, %v18_v2   ;;  %38 = vperm.xlu1 %183, %v18_v2   ;;  %v20_v24 = vlaneseq  ;;  %v209_v31 = vmov 0.0   ;;  %v150_v57 = vstv %s264_s3 }
   0x3   :  { %vm36_vm0 = vcmp.gt.s32.totalorder %v241_v3, 1  ;;  %vm22_vm1 = vcmp.gt.s32.totalorder %v241_v3, 0  ;;  %vm50_vm2 = vcmp.gt.s32.totalorder %v241_v3, 2  ;;  %vm64_vm3 = vcmp.gt.s32.totalorder %v241_v3, 3  ;;  %v172_v51 = vld [vmem:[%s263_s2] ss:$0 sm:$0xff] }
   0x4   :  { %v41_v5 = vsel %vm36_vm0, 1, %v203_v4  ;;  %v27_v6 = vsel %vm22_vm1, 1, %v203_v4  ;;  %v55_v7 = vsel %vm50_vm2, 1, %v203_v4  ;;  %v69_v8 = vsel %vm64_vm3, 1, %v203_v4 }
   0x5   :  { %vm106_vm4 = vcmp.gt.s32.totalorder %v241_v3, 6  ;;  %vm78_vm5 = vcmp.gt.s32.totalorder %v241_v3, 4  ;;  %vm92_vm6 = vcmp.gt.s32.totalorder %v241_v3, 5  ;;  %vm120_vm7 = vcmp.gt.s32.totalorder %v241_v3, 7 }
   0x6   :  { %185 = vset.pattern.permute.xlu0 %v203_v4  ;;  %186 = vset.pattern.permute.xlu1 %v203_v4  ;;  %v111_v12 = vsel %vm106_vm4, 1, %v203_v4  ;;  %v83_v13 = vsel %vm78_vm5, 1, %v203_v4  ;;  %v97_v14 = vsel %vm92_vm6, 1, %v203_v4  ;;  %v125_v17 = vsel %vm120_vm7, 1, %v203_v4 }
   0x7   :  { %24 = vperm.xlu0 %185, %v18_v2   ;;  %43 = vperm.xlu1 %186, %v41_v5   ;;  %v21_v27 = vand.u32 127, %v20_v24  ;;  %v146_v55 = vcvt.s32.f32 %v241_v3 }
   0x9   :  { %195 = vrcp.f32 %v146_v55 }
   0xb   :  { %29 = vperm.xlu0 %185, %v27_v6   ;;  %57 = vperm.xlu1 %186, %v55_v7  }
   0xf   :  { %187 = vset.pattern.permute.xlu1 %v204_v9  ;;  %71 = vperm.xlu0 %185, %v69_v8  }
  0x10   :  { %66 = vperm.xlu1 %187, %v18_v2  }
  0x13   :  { %190 = vset.pattern.permute.xlu0 %v205_v10 }
  0x14   :  { %188 = vset.pattern.permute.xlu1 %v206_v11  ;;  %94 = vperm.xlu0 %190, %v18_v2  }
  0x15   :  { %80 = vperm.xlu1 %188, %v18_v2  }
  0x16   :  { %v196_v56 = vpop.eup %195 }
  0x18   :  { %192 = vset.pattern.permute.xlu0 %v203_v4 }
  0x19   :  { %189 = vset.pattern.permute.xlu1 %v203_v4  ;;  %113 = vperm.xlu0 %192, %v111_v12  }
  0x1a   :  { %85 = vperm.xlu1 %189, %v83_v13  }
  0x1e   :  { %99 = vperm.xlu1 %189, %v97_v14  }
  0x22   :  { %191 = vset.pattern.permute.xlu1 %v207_v15 }
  0x23   :  { %108 = vperm.xlu1 %191, %v18_v2  }
  0x27   :  { %193 = vset.pattern.permute.xlu1 %v208_v16 }
  0x28   :  { %122 = vperm.xlu1 %193, %v18_v2  }
  0x2c   :  { %194 = vset.pattern.permute.xlu1 %v203_v4 }
  0x2d   :  { %127 = vperm.xlu1 %194, %v125_v17  }
  0x7d   :  { %v39_v18 = vpop.permute.xlu1 %38  ;;  %v53_v19 = vpop.permute.xlu0 %52 }
  0x7e   :  { %vm40_vm12 = vcmp.eq.s32.totalorder %v39_v18, %v21_v27  ;;  %vm54_vm14 = vcmp.eq.s32.totalorder %v53_v19, %v21_v27 }
  0x82   :  { %v44_v20 = vpop.permute.xlu1 %43  ;;  %v25_v22 = vpop.permute.xlu0 %24 }
  0x83   :  { %vm26_vm8 = vcmp.eq.s32.totalorder %v25_v22, %v21_v27  ;;  %vm45_vm10 = vcmp.eq.s32.totalorder %v44_v20, 1 }
  0x84   :  { %vm46_vm13 = vmand %vm40_vm12, %vm45_vm10 }
  0x85   :  { %v165_v34 = vsel %vm46_vm13, 1.0, %v209_v31 }
  0x86   :  { %v58_v21 = vpop.permute.xlu1 %57  ;;  %v30_v25 = vpop.permute.xlu0 %29 }
  0x87   :  { %vm31_vm9 = vcmp.eq.s32.totalorder %v30_v25, 1  ;;  %vm59_vm15 = vcmp.eq.s32.totalorder %v58_v21, 1 }
  0x88   :  { %vm32_vm11 = vmand %vm26_vm8, %vm31_vm9 }
  0x89   :  { %v164_v32 = vsel %vm32_vm11, 1.0, %v209_v31  ;;  %vm60_vm2 = vmand %vm54_vm14, %vm59_vm15 }
  0x8a   :  { %v72_v28 = vpop.permute.xlu0 %71  ;;  %v49_v35 = vadd.f32 %v165_v34, %v164_v32  ;;  %v166_v38 = vsel %vm60_vm2, 1.0, %v209_v31 }
  0x8b   :  { %v67_v23 = vpop.permute.xlu1 %66  ;;  %vm73_vm0 = vcmp.eq.s32.totalorder %v72_v28, 1 }
  0x8c   :  { %vm68_vm1 = vcmp.eq.s32.totalorder %v67_v23, %v21_v27  ;;  %v63_v39 = vadd.f32 %v166_v38, %v49_v35 }
  0x8d   :  { %vm74_vm4 = vmand %vm68_vm1, %vm73_vm0  ;;  %vm142_vm0 = vcmask 408576   ;;  %vm158_vm1 = vcmask 7168  }
  0x8e   :  { %v167_v40 = vsel %vm74_vm4, 1.0, %v209_v31 }
  0x8f   :  { %v95_v30 = vpop.permute.xlu0 %94  ;;  %v77_v43 = vadd.f32 %v167_v40, %v63_v39 }
  0x90   :  { %v81_v26 = vpop.permute.xlu1 %80  ;;  %vm96_vm6 = vcmp.eq.s32.totalorder %v95_v30, %v21_v27 }
  0x91   :  { %vm82_vm5 = vcmp.eq.s32.totalorder %v81_v26, %v21_v27 }
  0x94   :  { %v114_v36 = vpop.permute.xlu0 %113 }
  0x95   :  { %v86_v29 = vpop.permute.xlu1 %85  ;;  %vm115_vm9 = vcmp.eq.s32.totalorder %v114_v36, 1 }
  0x96   :  { %vm87_vm3 = vcmp.eq.s32.totalorder %v86_v29, 1 }
  0x97   :  { %vm88_vm8 = vmand %vm82_vm5, %vm87_vm3 }
  0x98   :  { %v168_v41 = vsel %vm88_vm8, 1.0, %v209_v31 }
  0x99   :  { %v100_v33 = vpop.permute.xlu1 %99  ;;  %v91_v45 = vadd.f32 %v168_v41, %v77_v43 }
  0x9a   :  { %vm101_vm7 = vcmp.eq.s32.totalorder %v100_v33, 1 }
  0x9b   :  { %vm102_vm11 = vmand %vm96_vm6, %vm101_vm7 }
  0x9c   :  { %v169_v44 = vsel %vm102_vm11, 1.0, %v209_v31 }
  0x9d   :  { %v105_v47 = vadd.f32 %v169_v44, %v91_v45 }
  0x9e   :  { %v109_v37 = vpop.permute.xlu1 %108 }
  0x9f   :  { %vm110_vm10 = vcmp.eq.s32.totalorder %v109_v37, %v21_v27 }
  0xa0   :  { %vm116_vm12 = vmand %vm110_vm10, %vm115_vm9 }
  0xa1   :  { %v170_v46 = vsel %vm116_vm12, 1.0, %v209_v31 }
  0xa2   :  { %v119_v49 = vadd.f32 %v170_v46, %v105_v47 }
  0xa3   :  { %v123_v42 = vpop.permute.xlu1 %122 }
  0xa4   :  { %vm124_vm13 = vcmp.eq.s32.totalorder %v123_v42, %v21_v27 }
  0xa8   :  { %v128_v48 = vpop.permute.xlu1 %127 }
  0xa9   :  { %vm129_vm14 = vcmp.eq.s32.totalorder %v128_v48, 1 }
  0xaa   :  { %vm130_vm15 = vmand %vm124_vm13, %vm129_vm14 }
  0xab   :  { %v171_v50 = vsel %vm130_vm15, 1.0, %v209_v31 }
  0xac   :  { %v133_v52 = vadd.f32 %v171_v50, %v119_v49 }
  0xae   :  { %v141_v53 = vmul.f32 %v172_v51, %v133_v52 }
  0xb0   :  { %v143_v54 = vsel %vm142_vm0, %v141_v53, 0.0 }
  0xb1   :  { %144 = vadd.xlane.f32.xlu0 %v143_v54 }
 0x13a   :  { %v145_v58 = vpop.xlane.xlu0 %144 }
 0x13b   :  { %v148_v59 = vmul.f32 %v196_v56, %v145_v58 }
 0x13d   :  { %v151_v60 = vadd.f32 %v150_v57, %v148_v59 }
 0x13f   :  { %v173_v61 = vmul.f32 -1.442695, %v151_v60 }
 0x141   :  { %197 = vpow2.f32 %v173_v61 }
 0x14e   :  { %v198_v62 = vpop.eup %197 }
 0x14f   :  { %v155_v63 = vadd.f32 1.0, %v198_v62 }
 0x151   :  { %199 = vrcp.f32 %v155_v63 }
 0x15e   :  { %v200_v0 = vpop.eup %199 }
 0x15f   :  { %159 = vst.msk [vmem:[%s265_s4] sm:$0xff] %vm158_vm1, %v200_v0 }

</bundles_post_ra>
